<compile_context>
chip_gen: v7x
topology: tpu7x:2x2x1
jax: 0.10.0
libtpu: 0.0.40
codegen_flags: <defaults>
</compile_context>

<pallas_src>
import functools

import jax
import jax.numpy as jnp
from jax.experimental import pallas as pl
from jax.experimental.pallas import tpu as pltpu

_F32_BYTES = 4
_ACT_VMEM_BUDGET = 12 << 20      # stay under the smallest default scoped VMEM (v5e: 16 MiB)
_DEFAULT_SCOPED_VMEM = 16 << 20
_VMEM_LIMIT_CAP = 48 << 20       # leave headroom below v7x's 64 MiB physical VMEM


def _dyad_kernel(wl_ref, wu_ref, b_ref, x_ref, o_ref, *, dyad_dim, dim_in, dim_out):
    """One batch tile: loop over dyad slices, two MXU dots each, add bias.

    wl_ref, wu_ref: (dyad_dim, dim_out, dim_in)   VMEM-resident weights
    b_ref:          (dyad_dim * dim_out, 1)       VMEM-resident bias
    x_ref:          (dyad_dim * dim_in, b_tile)   current batch tile of x
    o_ref:          (dyad_dim * dim_out, b_tile)  current batch tile of out
    """
    # TODO(synk): for very large dyad_dim, switch this static unroll to
    # lax.fori_loop(..., unroll=k) to bound code size / live ranges.
    for d in range(dyad_dim):
        # x1[d]: contiguous rows d*dim_in .. (d+1)*dim_in - 1 (static slice, free).
        x1_d = x_ref[pl.ds(d * dim_in, dim_in), :]
        # x2[d]: rows d, d+dyad_dim, d+2*dyad_dim, ...  (sublane-strided load;
        # replaces any materialized transpose of x).
        x2_d = x_ref[pl.ds(d, dim_in, stride=dyad_dim), :]

        acc = jnp.dot(wl_ref[d], x1_d, preferred_element_type=jnp.float32)
        acc = acc + jnp.dot(wu_ref[d], x2_d, preferred_element_type=jnp.float32)

        bias_d = b_ref[pl.ds(d * dim_out, dim_out), :]                   # (dim_out, 1)
        o_ref[pl.ds(d * dim_out, dim_out), :] = (acc + bias_d).astype(o_ref.dtype)


def _weight_vmem_bytes(dyad_dim, dim_in, dim_out):
    # wl + wu + bias, conservatively assume double-buffered by the pipeline.
    return 2 * (2 * dyad_dim * dim_out * dim_in + dyad_dim * dim_out) * _F32_BYTES


def _col_vmem_bytes(dyad_dim, dim_in, dim_out):
    # Per batch-column cost of the streamed x / out tiles (double-buffered).
    return 2 * dyad_dim * (dim_in + dim_out) * _F32_BYTES


def _pick_b_tile(B, dyad_dim, dim_in, dim_out):
    """Largest lane-dense (multiple-of-128) batch tile fitting the VMEM budget."""
    col_bytes = _col_vmem_bytes(dyad_dim, dim_in, dim_out)
    avail = max(_ACT_VMEM_BUDGET - _weight_vmem_bytes(dyad_dim, dim_in, dim_out),
                col_bytes * 128)
    cap = max(128, (avail // col_bytes) // 128 * 128)
    return B if B <= cap else cap


def dyad_forward(x, wl, wu, bias, *, dyad_dim, dim_in, dim_out, b_tile=None):
    """x: (dyad_dim*dim_in, B) f32 -> (dyad_dim*dim_out, B) f32."""
    rows_in, B = x.shape
    assert rows_in == dyad_dim * dim_in, "x row count must equal dyad_dim * dim_in"
    assert wl.shape == (dyad_dim, dim_out, dim_in)
    assert wu.shape == (dyad_dim, dim_out, dim_in)

    if bias is None:
        bias = jnp.zeros((dyad_dim * dim_out, 1), dtype=jnp.float32)
    bias = bias.reshape(dyad_dim * dim_out, 1).astype(jnp.float32)

    if b_tile is None:
        b_tile = _pick_b_tile(B, dyad_dim, dim_in, dim_out)
    num_b_tiles = pl.cdiv(B, b_tile)

    kernel = functools.partial(
        _dyad_kernel, dyad_dim=dyad_dim, dim_in=dim_in, dim_out=dim_out
    )

    grid_spec = pltpu.PrefetchScalarGridSpec(
        num_scalar_prefetch=0,
        grid=(num_b_tiles,),
        in_specs=[
            # Weights / bias: constant block index -> DMA'd once, VMEM-resident.
            pl.BlockSpec((dyad_dim, dim_out, dim_in), lambda j: (0, 0, 0)),   # wl
            pl.BlockSpec((dyad_dim, dim_out, dim_in), lambda j: (0, 0, 0)),   # wu
            pl.BlockSpec((dyad_dim * dim_out, 1),     lambda j: (0, 0)),      # bias
            # Activations: tile only along the batch (lane) axis.
            pl.BlockSpec((dyad_dim * dim_in, b_tile), lambda j: (0, j)),      # x
        ],
        out_specs=pl.BlockSpec((dyad_dim * dim_out, b_tile), lambda j: (0, j)),
    )

    # Advisory cost model for XLA's scheduler.
    flops = 4 * dyad_dim * dim_out * dim_in * B          # two matmuls, 2*M*K*N each
    bytes_accessed = _F32_BYTES * (
        x.size + dyad_dim * dim_out * B + wl.size + wu.size + bias.size
    )
    cost = pl.CostEstimate(flops=flops, transcendentals=0,
                           bytes_accessed=bytes_accessed)

    # Raise the scoped-VMEM limit only if this configuration actually needs it.
    cp_kwargs = dict(dimension_semantics=("parallel",))
    vmem_bytes = (_weight_vmem_bytes(dyad_dim, dim_in, dim_out)
                  + _col_vmem_bytes(dyad_dim, dim_in, dim_out) * b_tile)
    if vmem_bytes + (2 << 20) > _DEFAULT_SCOPED_VMEM:
        cp_kwargs["vmem_limit_bytes"] = min(vmem_bytes + (4 << 20), _VMEM_LIMIT_CAP)

    return pl.pallas_call(
        kernel,
        out_shape=jax.ShapeDtypeStruct((dyad_dim * dim_out, B), jnp.float32),
        grid_spec=grid_spec,
        cost_estimate=cost,
        compiler_params=pltpu.CompilerParams(**cp_kwargs),
    )(wl, wu, bias, x)


def dyad_reference(x, wl, wu, bias, *, dyad_dim, dim_in, dim_out):
    B = x.shape[-1]
    x1 = x.reshape(dyad_dim, dim_in, B)
    x2 = jnp.transpose(x.reshape(dim_in, dyad_dim, B), (1, 0, 2))
    out = jnp.einsum("doi,dib->dob", wl, x1) + jnp.einsum("doi,dib->dob", wu, x2)
    out = out.reshape(dyad_dim * dim_out, B)
    if bias is not None:
        out = out + bias
    return out


if __name__ == "__main__":
    # Small shapes consistent with the module.
    dyad_dim, dim_in, dim_out = 4, 32, 32

    key = jax.random.PRNGKey(0)
    k_wu, k_wl, k_b, k_x = jax.random.split(key, 4)

    # torch.nn.init.uniform_(-k, k) with k = 1/sqrt(dim_in * dyad_dim)
    k = 1.0 / jnp.sqrt(jnp.float32(dim_in * dyad_dim))
    wu = jax.random.uniform(k_wu, (dyad_dim, dim_out, dim_in),
                            minval=-k, maxval=k, dtype=jnp.float32)
    wl = jax.random.uniform(k_wl, (dyad_dim, dim_out, dim_in),
                            minval=-k, maxval=k, dtype=jnp.float32)
    bias = jax.random.uniform(k_b, (dyad_dim * dim_out, 1),
                              minval=-k, maxval=k, dtype=jnp.float32)

    # Case 1: B = 128 -> single grid step (whole problem in one kernel invocation).
    B1 = 128
    x1 = jax.random.normal(k_x, (dyad_dim * dim_in, B1), dtype=jnp.float32)
    out1 = jax.block_until_ready(
        dyad_forward(x1, wl, wu, bias,
                     dyad_dim=dyad_dim, dim_in=dim_in, dim_out=dim_out))
    ref1 = dyad_reference(x1, wl, wu, bias,
                          dyad_dim=dyad_dim, dim_in=dim_in, dim_out=dim_out)
    assert out1.shape == (dyad_dim * dim_out, B1)
    assert jnp.allclose(out1, ref1, atol=1e-5, rtol=1e-5), "mismatch vs reference (B=128)"

    # Case 2: larger B with a forced 128-lane tile to exercise the batch-tiled grid
    # with VMEM-resident weights across multiple pipeline steps.
    B2 = 384
    x2 = jax.random.normal(jax.random.PRNGKey(1),
                           (dyad_dim * dim_in, B2), dtype=jnp.float32)
    out2 = jax.block_until_ready(
        dyad_forward(x2, wl, wu, bias,
                     dyad_dim=dyad_dim, dim_in=dim_in, dim_out=dim_out, b_tile=128))
    ref2 = dyad_reference(x2, wl, wu, bias,
                          dyad_dim=dyad_dim, dim_in=dim_in, dim_out=dim_out)
    assert out2.shape == (dyad_dim * dim_out, B2)
    assert jnp.allclose(out2, ref2, atol=1e-5, rtol=1e-5), "mismatch vs reference (B=384)"

    print("KERNEL_OK")
</pallas_src>

<mosaic_0001>
module attributes {stable_mosaic.version = 11 : i64} {
  func.func @_dyad_kernel(%arg0: i32, %arg1: memref<4x32x32xf32, #tpu.memory_space<vmem>>, %arg2: memref<4x32x32xf32, #tpu.memory_space<vmem>>, %arg3: memref<128x1xf32, #tpu.memory_space<vmem>>, %arg4: memref<128x128xf32, #tpu.memory_space<vmem>>, %arg5: memref<128x128xf32, #tpu.memory_space<vmem>>) attributes {dimension_semantics = [#tpu.dimension_semantics<parallel>], iteration_bounds = array<i64: 1>, scalar_prefetch = 0 : i64, scratch_operands = 0 : i64, tpu.core_type = #tpu.core_type<tc>, window_params = [{pipeline_mode = #tpu.pipeline_mode<synchronous>, transform_indices = @transform_0, window_bounds = array<i64: 4, 32, 32>}, {pipeline_mode = #tpu.pipeline_mode<synchronous>, transform_indices = @transform_1, window_bounds = array<i64: 4, 32, 32>}, {pipeline_mode = #tpu.pipeline_mode<synchronous>, transform_indices = @transform_2, window_bounds = array<i64: 128, 1>}, {transform_indices = @transform_3, window_bounds = array<i64: 128, 128>}, {transform_indices = @transform_4, window_bounds = array<i64: 128, 128>}]} {
    %c0 = arith.constant 0 : index
    %c0_0 = arith.constant 0 : index
    %0 = vector.load %arg4[%c0, %c0_0] : memref<128x128xf32, #tpu.memory_space<vmem>>, vector<32x128xf32>
    %c0_1 = arith.constant 0 : index
    %c0_2 = arith.constant 0 : index
    %1 = tpu.strided_load %arg4[%c0_1, %c0_2] {strides = array<i32: 4, 1>} : memref<128x128xf32, #tpu.memory_space<vmem>>, vector<32x128xf32>
    %c0_3 = arith.constant 0 : index
    %c0_4 = arith.constant 0 : index
    %c0_5 = arith.constant 0 : index
    %2 = vector.load %arg1[%c0_3, %c0_4, %c0_5] : memref<4x32x32xf32, #tpu.memory_space<vmem>>, vector<1x32x32xf32>
    %3 = vector.shape_cast %2 : vector<1x32x32xf32> to vector<32x32xf32>
    %cst = arith.constant dense<0.000000e+00> : vector<32x128xf32>
    %4 = tpu.matmul %3, %0, %cst {dimension_numbers = #tpu.dot_dimension_numbers<[1], [0], [0], [1], [0, 0, 1, 1], [], []>} : vector<32x32xf32>, vector<32x128xf32>, vector<32x128xf32> -> vector<32x128xf32>
    %c0_6 = arith.constant 0 : index
    %c0_7 = arith.constant 0 : index
    %c0_8 = arith.constant 0 : index
    %5 = vector.load %arg2[%c0_6, %c0_7, %c0_8] : memref<4x32x32xf32, #tpu.memory_space<vmem>>, vector<1x32x32xf32>
    %6 = vector.shape_cast %5 : vector<1x32x32xf32> to vector<32x32xf32>
    %cst_9 = arith.constant dense<0.000000e+00> : vector<32x128xf32>
    %7 = tpu.matmul %6, %1, %cst_9 {dimension_numbers = #tpu.dot_dimension_numbers<[1], [0], [0], [1], [0, 0, 1, 1], [], []>} : vector<32x32xf32>, vector<32x128xf32>, vector<32x128xf32> -> vector<32x128xf32>
    %8 = arith.addf %4, %7 : vector<32x128xf32>
    %c0_10 = arith.constant 0 : index
    %c0_11 = arith.constant 0 : index
    %9 = vector.load %arg3[%c0_10, %c0_11] : memref<128x1xf32, #tpu.memory_space<vmem>>, vector<32x1xf32>
    %10 = vector.broadcast %9 : vector<32x1xf32> to vector<32x128xf32>
    %11 = arith.addf %8, %10 : vector<32x128xf32>
    %c0_12 = arith.constant 0 : index
    %c0_13 = arith.constant 0 : index
    %12 = vector.load %arg5[%c0_12, %c0_13] : memref<128x128xf32, #tpu.memory_space<vmem>>, vector<32x128xf32>
    tpu.vector_store %arg5[%c0_12, %c0_13], %11 {strides = array<i32>} : memref<128x128xf32, #tpu.memory_space<vmem>>, vector<32x128xf32>,
    %c32 = arith.constant 32 : index
    %c0_14 = arith.constant 0 : index
    %13 = vector.load %arg4[%c32, %c0_14] : memref<128x128xf32, #tpu.memory_space<vmem>>, vector<32x128xf32>
    %c1 = arith.constant 1 : index
    %c0_15 = arith.constant 0 : index
    %14 = tpu.strided_load %arg4[%c1, %c0_15] {strides = array<i32: 4, 1>} : memref<128x128xf32, #tpu.memory_space<vmem>>, vector<32x128xf32>
    %c1_16 = arith.constant 1 : index
    %c0_17 = arith.constant 0 : index
    %c0_18 = arith.constant 0 : index
    %15 = vector.load %arg1[%c1_16, %c0_17, %c0_18] : memref<4x32x32xf32, #tpu.memory_space<vmem>>, vector<1x32x32xf32>
    %16 = vector.shape_cast %15 : vector<1x32x32xf32> to vector<32x32xf32>
    %cst_19 = arith.constant dense<0.000000e+00> : vector<32x128xf32>
    %17 = tpu.matmul %16, %13, %cst_19 {dimension_numbers = #tpu.dot_dimension_numbers<[1], [0], [0], [1], [0, 0, 1, 1], [], []>} : vector<32x32xf32>, vector<32x128xf32>, vector<32x128xf32> -> vector<32x128xf32>
    %c1_20 = arith.constant 1 : index
    %c0_21 = arith.constant 0 : index
    %c0_22 = arith.constant 0 : index
    %18 = vector.load %arg2[%c1_20, %c0_21, %c0_22] : memref<4x32x32xf32, #tpu.memory_space<vmem>>, vector<1x32x32xf32>
    %19 = vector.shape_cast %18 : vector<1x32x32xf32> to vector<32x32xf32>
    %cst_23 = arith.constant dense<0.000000e+00> : vector<32x128xf32>
    %20 = tpu.matmul %19, %14, %cst_23 {dimension_numbers = #tpu.dot_dimension_numbers<[1], [0], [0], [1], [0, 0, 1, 1], [], []>} : vector<32x32xf32>, vector<32x128xf32>, vector<32x128xf32> -> vector<32x128xf32>
    %21 = arith.addf %17, %20 : vector<32x128xf32>
    %c32_24 = arith.constant 32 : index
    %c0_25 = arith.constant 0 : index
    %22 = vector.load %arg3[%c32_24, %c0_25] : memref<128x1xf32, #tpu.memory_space<vmem>>, vector<32x1xf32>
    %23 = vector.broadcast %22 : vector<32x1xf32> to vector<32x128xf32>
    %24 = arith.addf %21, %23 : vector<32x128xf32>
    %c32_26 = arith.constant 32 : index
    %c0_27 = arith.constant 0 : index
    %25 = vector.load %arg5[%c32_26, %c0_27] : memref<128x128xf32, #tpu.memory_space<vmem>>, vector<32x128xf32>
    tpu.vector_store %arg5[%c32_26, %c0_27], %24 {strides = array<i32>} : memref<128x128xf32, #tpu.memory_space<vmem>>, vector<32x128xf32>,
    %c64 = arith.constant 64 : index
    %c0_28 = arith.constant 0 : index
    %26 = vector.load %arg4[%c64, %c0_28] : memref<128x128xf32, #tpu.memory_space<vmem>>, vector<32x128xf32>
    %c2 = arith.constant 2 : index
    %c0_29 = arith.constant 0 : index
    %27 = tpu.strided_load %arg4[%c2, %c0_29] {strides = array<i32: 4, 1>} : memref<128x128xf32, #tpu.memory_space<vmem>>, vector<32x128xf32>
    %c2_30 = arith.constant 2 : index
    %c0_31 = arith.constant 0 : index
    %c0_32 = arith.constant 0 : index
    %28 = vector.load %arg1[%c2_30, %c0_31, %c0_32] : memref<4x32x32xf32, #tpu.memory_space<vmem>>, vector<1x32x32xf32>
    %29 = vector.shape_cast %28 : vector<1x32x32xf32> to vector<32x32xf32>
    %cst_33 = arith.constant dense<0.000000e+00> : vector<32x128xf32>
    %30 = tpu.matmul %29, %26, %cst_33 {dimension_numbers = #tpu.dot_dimension_numbers<[1], [0], [0], [1], [0, 0, 1, 1], [], []>} : vector<32x32xf32>, vector<32x128xf32>, vector<32x128xf32> -> vector<32x128xf32>
    %c2_34 = arith.constant 2 : index
    %c0_35 = arith.constant 0 : index
    %c0_36 = arith.constant 0 : index
    %31 = vector.load %arg2[%c2_34, %c0_35, %c0_36] : memref<4x32x32xf32, #tpu.memory_space<vmem>>, vector<1x32x32xf32>
    %32 = vector.shape_cast %31 : vector<1x32x32xf32> to vector<32x32xf32>
    %cst_37 = arith.constant dense<0.000000e+00> : vector<32x128xf32>
    %33 = tpu.matmul %32, %27, %cst_37 {dimension_numbers = #tpu.dot_dimension_numbers<[1], [0], [0], [1], [0, 0, 1, 1], [], []>} : vector<32x32xf32>, vector<32x128xf32>, vector<32x128xf32> -> vector<32x128xf32>
    %34 = arith.addf %30, %33 : vector<32x128xf32>
    %c64_38 = arith.constant 64 : index
    %c0_39 = arith.constant 0 : index
    %35 = vector.load %arg3[%c64_38, %c0_39] : memref<128x1xf32, #tpu.memory_space<vmem>>, vector<32x1xf32>
    %36 = vector.broadcast %35 : vector<32x1xf32> to vector<32x128xf32>
    %37 = arith.addf %34, %36 : vector<32x128xf32>
    %c64_40 = arith.constant 64 : index
    %c0_41 = arith.constant 0 : index
    %38 = vector.load %arg5[%c64_40, %c0_41] : memref<128x128xf32, #tpu.memory_space<vmem>>, vector<32x128xf32>
    tpu.vector_store %arg5[%c64_40, %c0_41], %37 {strides = array<i32>} : memref<128x128xf32, #tpu.memory_space<vmem>>, vector<32x128xf32>,
    %c96 = arith.constant 96 : index
    %c0_42 = arith.constant 0 : index
    %39 = vector.load %arg4[%c96, %c0_42] : memref<128x128xf32, #tpu.memory_space<vmem>>, vector<32x128xf32>
    %c3 = arith.constant 3 : index
    %c0_43 = arith.constant 0 : index
    %40 = tpu.strided_load %arg4[%c3, %c0_43] {strides = array<i32: 4, 1>} : memref<128x128xf32, #tpu.memory_space<vmem>>, vector<32x128xf32>
    %c3_44 = arith.constant 3 : index
    %c0_45 = arith.constant 0 : index
    %c0_46 = arith.constant 0 : index
    %41 = vector.load %arg1[%c3_44, %c0_45, %c0_46] : memref<4x32x32xf32, #tpu.memory_space<vmem>>, vector<1x32x32xf32>
    %42 = vector.shape_cast %41 : vector<1x32x32xf32> to vector<32x32xf32>
    %cst_47 = arith.constant dense<0.000000e+00> : vector<32x128xf32>
    %43 = tpu.matmul %42, %39, %cst_47 {dimension_numbers = #tpu.dot_dimension_numbers<[1], [0], [0], [1], [0, 0, 1, 1], [], []>} : vector<32x32xf32>, vector<32x128xf32>, vector<32x128xf32> -> vector<32x128xf32>
    %c3_48 = arith.constant 3 : index
    %c0_49 = arith.constant 0 : index
    %c0_50 = arith.constant 0 : index
    %44 = vector.load %arg2[%c3_48, %c0_49, %c0_50] : memref<4x32x32xf32, #tpu.memory_space<vmem>>, vector<1x32x32xf32>
    %45 = vector.shape_cast %44 : vector<1x32x32xf32> to vector<32x32xf32>
    %cst_51 = arith.constant dense<0.000000e+00> : vector<32x128xf32>
    %46 = tpu.matmul %45, %40, %cst_51 {dimension_numbers = #tpu.dot_dimension_numbers<[1], [0], [0], [1], [0, 0, 1, 1], [], []>} : vector<32x32xf32>, vector<32x128xf32>, vector<32x128xf32> -> vector<32x128xf32>
    %47 = arith.addf %43, %46 : vector<32x128xf32>
    %c96_52 = arith.constant 96 : index
    %c0_53 = arith.constant 0 : index
    %48 = vector.load %arg3[%c96_52, %c0_53] : memref<128x1xf32, #tpu.memory_space<vmem>>, vector<32x1xf32>
    %49 = vector.broadcast %48 : vector<32x1xf32> to vector<32x128xf32>
    %50 = arith.addf %47, %49 : vector<32x128xf32>
    %c96_54 = arith.constant 96 : index
    %c0_55 = arith.constant 0 : index
    %51 = vector.load %arg5[%c96_54, %c0_55] : memref<128x128xf32, #tpu.memory_space<vmem>>, vector<32x128xf32>
    tpu.vector_store %arg5[%c96_54, %c0_55], %50 {strides = array<i32>} : memref<128x128xf32, #tpu.memory_space<vmem>>, vector<32x128xf32>,
    return
  }
  func.func @transform_0(%arg0: i32) -> (i32, i32, i32) {
    %c0_i32 = arith.constant 0 : i32
    %c0_i32_0 = arith.constant 0 : i32
    %c0_i32_1 = arith.constant 0 : i32
    %c0_i32_2 = arith.constant 0 : i32
    return %c0_i32, %c0_i32_0, %c0_i32_1 : i32, i32, i32
  }
  func.func @transform_1(%arg0: i32) -> (i32, i32, i32) {
    %c0_i32 = arith.constant 0 : i32
    %c0_i32_0 = arith.constant 0 : i32
    %c0_i32_1 = arith.constant 0 : i32
    %c0_i32_2 = arith.constant 0 : i32
    return %c0_i32, %c0_i32_0, %c0_i32_1 : i32, i32, i32
  }
  func.func @transform_2(%arg0: i32) -> (i32, i32) {
    %c0_i32 = arith.constant 0 : i32
    %c0_i32_0 = arith.constant 0 : i32
    %c0_i32_1 = arith.constant 0 : i32
    return %c0_i32, %c0_i32_0 : i32, i32
  }
  func.func @transform_3(%arg0: i32) -> (i32, i32) {
    %c0_i32 = arith.constant 0 : i32
    %c0_i32_0 = arith.constant 0 : i32
    return %c0_i32, %arg0 : i32, i32
  }
  func.func @transform_4(%arg0: i32) -> (i32, i32) {
    %c0_i32 = arith.constant 0 : i32
    %c0_i32_0 = arith.constant 0 : i32
    return %c0_i32, %arg0 : i32, i32
  }
}

</mosaic_0001>

<bundles_post_ra>
// kernel: tpu_custom_call.1
= control target key start
LH: loop header
LB: loop body
LE: loop exit
PB: predicated region body
PF: predicated region fallthrough
CT: control target
= control target key end

     0   :  { %9 = vsyncpa [#allocation3], 0  ;;  %s1638_s0 = inlined_call_operand.vmem [shape: f32[4,32,32], index: 0, kind: input, shape index: {}]   ;;  %s1639_s1 = inlined_call_operand.hbm [shape: f32[4,32,32], index: 1, kind: input, shape index: {}]   ;;  %s1640_s2 = inlined_call_operand.vmem [shape: f32[128,1], index: 2, kind: input, shape index: {}]   ;;  %s1641_s3 = inlined_call_operand.hbm [shape: f32[128,128], index: 3, kind: input, shape index: {}]   ;;  %s1642_s4 = inlined_call_operand.hbm [shape: f32[128,128], index: 4, kind: output, shape index: {}]  }
   0x1   :  { %10 = vsyncpa [#allocation6], 0 }
   0x2   :  { %11 = vsyncpa [#allocation4], 0  ;;  %s1434_s15 = smov [#allocation2]   ;;  %s1362_s19 = scalar_lea.hbm %s1639_s1, 2048 }
   0x3   :  { %s19_s16 = sshll.u32 %s1434_s15, 4  ;;  %p1363_p0 = scmp.ne.s32.totalorder %s1639_s1, %s1362_s19  ;;  %s20_s16 = int_to_ptr.vmem [resolvable:$true] %s19_s16 }
   0x4   :  { %p1366_p1 = scmp.lt.u32.totalorder %s1362_s19, %s1639_s1 }
   0x6   :  { %p1368_p2 = pnand %p1366_p1, %p1363_p0 }
   0x8   :  { %1371 = shalt.err (!%p1368_p2)
}
   0x9   :  { %s1372_s24 = scalar_lea.vmem %s20_s16, 2048  ;;  %p1377_p4 = scmp.lt.s32.totalorder %s20_s16, %s20_s16 }
   0xa   :  { %p1373_p3 = scmp.ne.s32.totalorder %s20_s16, %s1372_s24  ;;  %p1378_p5 = scmp.lt.s32.totalorder %s1372_s24, %s1372_s24 }
   0xc   :  { %p1379_p6 = por %p1378_p5, %p1377_p4 }
   0xe   :  { %p1380_p7 = pnand %p1379_p6, %p1373_p3 }
  0x10   :  { %1383 = shalt.err (!%p1380_p7)
}
  0x11   :  { %s1435_s25 = smov 128   ;;  %s1436_s26 = smov 8  }
  0x12   :  { %25 = dma.hbm_to_vmem [thread:$0]  %s1639_s1, 2048, %s20_s16, [#allocation3], %s1435_s25, %s1435_s25, %s1436_s26  }
  0x13   :  { %s1437_s29 = smov [#allocation5]   ;;  %s1384_s7 = scalar_lea.hbm %s1641_s3, 2048 }
  0x14   :  { %s33_s30 = sshll.u32 %s1437_s29, 4  ;;  %p1385_p8 = scmp.ne.s32.totalorder %s1641_s3, %s1384_s7  ;;  %s34_s30 = int_to_ptr.vmem [resolvable:$true] %s33_s30 }
  0x15   :  { %p1388_p9 = scmp.lt.u32.totalorder %s1384_s7, %s1641_s3 }
  0x17   :  { %p1390_p10 = pnand %p1388_p9, %p1385_p8 }
  0x19   :  { %1393 = shalt.err (!%p1390_p10)
}
  0x1a   :  { %s1394_s12 = scalar_lea.vmem %s34_s30, 2048  ;;  %p1399_p12 = scmp.lt.s32.totalorder %s34_s30, %s34_s30 }
  0x1b   :  { %p1395_p11 = scmp.ne.s32.totalorder %s34_s30, %s1394_s12  ;;  %p1400_p13 = scmp.lt.s32.totalorder %s1394_s12, %s1394_s12 }
  0x1d   :  { %p1401_p0 = por %p1400_p13, %p1399_p12 }
  0x1f   :  { %p1402_p1 = pnand %p1401_p0, %p1395_p11 }
  0x21   :  { %1405 = shalt.err (!%p1402_p1)
}
  0x22   :  { %39 = dma.hbm_to_vmem [thread:$0]  %s1641_s3, 2048, %s34_s30, [#allocation6], %s1435_s25, %s1435_s25, %s1436_s26  }
  0x23   :  { %1428 = dma.done.wait [#allocation3], 2048  }
  0x24   :  { %1429 = vsyncadd [#allocation3], 4294965248 }
  0x25   :  { %1430 = dma.done.wait [#allocation6], 2048  }
  0x26   :  { %1431 = vsyncadd [#allocation6], 4294965248  ;;  %v1438_v0 = vmov 0   ;;  %vm65_vm0 = vcmask 261120   ;;  %v50_v1 = vld [vmem:[#allocation5] ss:$4 sm:$0xff] }
  0x27   :  { %1361 = vset.pattern.permute.xlu1 %v1438_v0  ;;  %1360 = vset.pattern.permute.xlu0 %v1438_v0  ;;  %v52_v2 = vld [vmem:[#allocation5 + $0x20] ss:$4 sm:$0xff]  ;;  %v297_v3 = vld [vmem:[#allocation5 + $0x1] ss:$4 sm:$0xff]  ;;  %v545_v31 = vld [vmem:[#allocation5 + $0x2] ss:$4 sm:$0xff] }
  0x28   :  { %v1274_v4 = vpack.c.bf16 %v52_v2, %v50_v1  ;;  %v299_v5 = vld [vmem:[#allocation5 + $0x21] ss:$4 sm:$0xff]  ;;  %v54_v6 = vld [vmem:[#allocation5 + $0x40] ss:$4 sm:$0xff]  ;;  %v547_v32 = vld [vmem:[#allocation5 + $0x22] ss:$4 sm:$0xff] }
  0x29   :  { %v56_v7 = vld [vmem:[#allocation5 + $0x60] ss:$4 sm:$0xff]  ;;  %v1290_v8 = vpack.c.bf16 %v299_v5, %v297_v3  ;;  %v301_v10 = vld [vmem:[#allocation5 + $0x41] ss:$4 sm:$0xff]  ;;  %v793_v34 = vld [vmem:[#allocation5 + $0x3] ss:$4 sm:$0xff]  ;;  %v1306_v38 = vpack.c.bf16 %v547_v32, %v545_v31 }
  0x2a   :  { %v1278_v9 = vpack.c.bf16 %v56_v7, %v54_v6  ;;  %v303_v11 = vld [vmem:[#allocation5 + $0x61] ss:$4 sm:$0xff]  ;;  %1275 = vmatprep.subr.bf16.mxu0 %v1274_v4  ;;  %v795_v35 = vld [vmem:[#allocation5 + $0x23] ss:$4 sm:$0xff]  ;;  %v549_v41 = vld [vmem:[#allocation5 + $0x42] ss:$4 sm:$0xff] }
  0x2b   :  { %v61_v12 = vld [vmem:[#allocation2] sm:$0xff]  ;;  %v1294_v13 = vpack.c.bf16 %v303_v11, %v301_v10  ;;  %1291 = vmatprep.subr.bf16.mxu1 %v1290_v8  ;;  %1277 = vmatpush3.bf16.msra.mxu0 %v1274_v4  ;;  %v47_v16 = vld [vmem:[#allocation5 + $0x8] sm:$0xff]  ;;  %v48_v21 = vld [vmem:[#allocation5 + $0x10] sm:$0xff]  ;;  %v1322_v40 = vpack.c.bf16 %v795_v35, %v793_v34 }
  0x2c   :  { %1170 = vmatprep.mubr.msk.f32.mxu0 %vm65_vm0, %v61_v12  ;;  %v310_v14 = vld [vmem:[#allocation2 + $0x20] sm:$0xff]  ;;  %1293 = vmatpush3.bf16.msra.mxu1 %v1290_v8  ;;  %v293_v19 = vld [vmem:[#allocation5 + $0x28] sm:$0xff]  ;;  %v49_v22 = vld [vmem:[#allocation5 + $0x18] sm:$0xff] }
  0x2d   :  { %v46_v15 = vld [vmem:[#allocation5] sm:$0xff]  ;;  %1279 = vmatprep.subr.bf16.mxu0 %v1278_v9  ;;  %1295 = vmatprep.subr.bf16.mxu1 %v1294_v13  ;;  %v62_v23 = vld [vmem:[#allocation2 + $0x8] sm:$0xff]  ;;  %v294_v24 = vld [vmem:[#allocation5 + $0x30] sm:$0xff]  ;;  %v1286_v28 = vpack.c.bf16 %v49_v22, %v48_v21 }
  0x2e   :  { %v292_v17 = vld [vmem:[#allocation5 + $0x20] sm:$0xff]  ;;  %v1282_v18 = vpack.c.bf16 %v47_v16, %v46_v15  ;;  %1198 = vmatprep.mubr.msk.f32.mxu1 %vm65_vm0, %v310_v14  ;;  %v295_v25 = vld [vmem:[#allocation5 + $0x38] sm:$0xff]  ;;  %v311_v26 = vld [vmem:[#allocation2 + $0x28] sm:$0xff] }
  0x2f   :  { %v1298_v20 = vpack.c.bf16 %v293_v19, %v292_v17  ;;  %1281 = vmatpush3.bf16.msra.mxu0 %v1278_v9  ;;  %v63_v27 = vld [vmem:[#allocation2 + $0x10] sm:$0xff]  ;;  %v1302_v30 = vpack.c.bf16 %v295_v25, %v294_v24  ;;  %v64_v33 = vld [vmem:[#allocation2 + $0x18] sm:$0xff]  ;;  %v57_v37 = vld [vmem:[%s1638_s0] sm:$0xff] }
  0x30   :  { %1297 = vmatpush3.bf16.msra.mxu1 %v1294_v13  ;;  %1283 = vmatprep.subr.bf16.mxu0 %v1282_v18  ;;  %v312_v29 = vld [vmem:[#allocation2 + $0x30] sm:$0xff]  ;;  %v313_v36 = vld [vmem:[#allocation2 + $0x38] sm:$0xff]  ;;  %v1062_v39 = vld [vmem:[%s1638_s0 + $0x20] sm:$0xff] }
  0x31   :  { %1299 = vmatprep.subr.bf16.mxu1 %v1298_v20  ;;  %v551_v42 = vld [vmem:[#allocation5 + $0x62] ss:$4 sm:$0xff]  ;;  %v797_v44 = vld [vmem:[#allocation5 + $0x43] ss:$4 sm:$0xff] }
  0x32   :  { %1171 = vmatmul.mubr.msk.f32.vlgmr.msra.gmra.mrb[0].mxu0 %vm65_vm0, %v62_v23  ;;  %v58_v43 = vld [vmem:[%s1638_s0 + $0x8] sm:$0xff]  ;;  %v59_v47 = vld [vmem:[%s1638_s0 + $0x10] sm:$0xff]  ;;  %v1310_v48 = vpack.c.bf16 %v551_v42, %v549_v41  ;;  %v540_v51 = vld [vmem:[#allocation5 + $0x40] sm:$0xff] }
  0x33   :  { %1199 = vmatmul.mubr.msk.f32.vlgmr.msra.gmra.mrb[0].mxu1 %vm65_vm0, %v311_v26  ;;  %1285 = vmatpush3.bf16.msra.mxu0 %v1282_v18  ;;  %v799_v45 = vld [vmem:[#allocation5 + $0x63] ss:$4 sm:$0xff] }
  0x34   :  { %1301 = vmatpush3.bf16.msra.mxu1 %v1298_v20  ;;  %1173 = vmatprep.mubr.msk.f32.mxu0 %vm65_vm0, %v63_v27  ;;  %v1063_v46 = vld [vmem:[%s1638_s0 + $0x28] sm:$0xff]  ;;  %v1064_v49 = vld [vmem:[%s1638_s0 + $0x30] sm:$0xff]  ;;  %v1326_v50 = vpack.c.bf16 %v799_v45, %v797_v44  ;;  %v60_v53 = vld [vmem:[%s1638_s0 + $0x18] sm:$0xff] }
  0x35   :  { %1201 = vmatprep.mubr.msk.f32.mxu1 %vm65_vm0, %v312_v29  ;;  %1287 = vmatprep.subr.bf16.mxu0 %v1286_v28  ;;  %v541_v52 = vld [vmem:[#allocation5 + $0x48] sm:$0xff]  ;;  %v788_v54 = vld [vmem:[#allocation5 + $0x60] sm:$0xff]  ;;  %v1065_v56 = vld [vmem:[%s1638_s0 + $0x38] sm:$0xff] }
  0x36   :  { %1174 = vmatmul.mubr.msk.f32.gmra.mrb[2].mxu0 %vm65_vm0, %v64_v33  ;;  %1303 = vmatprep.subr.bf16.mxu1 %v1302_v30  ;;  %v789_v55 = vld [vmem:[#allocation5 + $0x68] sm:$0xff]  ;;  %v558_v57 = vld [vmem:[#allocation2 + $0x40] sm:$0xff]  ;;  %v1314_v58 = vpack.c.bf16 %v541_v52, %v540_v51  ;;  %v542_v61 = vld [vmem:[#allocation5 + $0x50] sm:$0xff] }
  0x37   :  { %1202 = vmatmul.mubr.msk.f32.gmra.mrb[2].mxu1 %vm65_vm0, %v313_v36  ;;  %1289 = vmatpush3.bf16.msra.mxu0 %v1286_v28  ;;  %v806_v59 = vld [vmem:[#allocation2 + $0x60] sm:$0xff]  ;;  %v1330_v60 = vpack.c.bf16 %v789_v55, %v788_v54  ;;  %v543_v62 = vld [vmem:[#allocation5 + $0x58] sm:$0xff]  ;;  %v559_v63 = vld [vmem:[#allocation2 + $0x48] sm:$0xff] }
  0x38   :  { %1305 = vmatpush3.bf16.msra.mxu1 %v1302_v30  ;;  %1184 = vmatprep.mubr.msk.f32.mxu0 %vm65_vm0, %v57_v37  ;;  %v790_v0 = vld [vmem:[#allocation5 + $0x70] sm:$0xff]  ;;  %v791_v1 = vld [vmem:[#allocation5 + $0x78] sm:$0xff]  ;;  %v807_v2 = vld [vmem:[#allocation2 + $0x68] sm:$0xff]  ;;  %v1318_v4 = vpack.c.bf16 %v543_v62, %v542_v61 }
  0x39   :  { %1212 = vmatprep.mubr.msk.f32.mxu1 %vm65_vm0, %v1062_v39  ;;  %1307 = vmatprep.subr.bf16.mxu0 %v1306_v38  ;;  %v560_v3 = vld [vmem:[#allocation2 + $0x50] sm:$0xff]  ;;  %v1334_v6 = vpack.c.bf16 %v791_v1, %v790_v0  ;;  %v561_v7 = vld [vmem:[#allocation2 + $0x58] sm:$0xff]  ;;  %v1074_v9 = vld [vmem:[%s1638_s0 + $0x40] sm:$0xff] }
  0x3a   :  { %1185 = vmatmul.mubr.msk.f32.vlgmr.msra.gmra.mrb[0].mxu0 %vm65_vm0, %v58_v43  ;;  %1323 = vmatprep.subr.bf16.mxu1 %v1322_v40  ;;  %v808_v5 = vld [vmem:[#allocation2 + $0x70] sm:$0xff]  ;;  %v809_v8 = vld [vmem:[#allocation2 + $0x78] sm:$0xff]  ;;  %v1086_v10 = vld [vmem:[%s1638_s0 + $0x60] sm:$0xff] }
  0x3b   :  { %1213 = vmatmul.mubr.msk.f32.vlgmr.msra.gmra.mrb[0].mxu1 %vm65_vm0, %v1063_v46  ;;  %1309 = vmatpush3.bf16.msra.mxu0 %v1306_v38  ;;  %v262_v11 = vld [vmem:[%s1640_s2 + $0x10] sm:$0xff]  ;;  %v1075_v12 = vld [vmem:[%s1638_s0 + $0x48] sm:$0xff]  ;;  %v260_v13 = vld [vmem:[%s1640_s2] sm:$0xff] }
  0x3c   :  { %1325 = vmatpush3.bf16.msra.mxu1 %v1322_v40  ;;  %1187 = vmatprep.mubr.msk.f32.mxu0 %vm65_vm0, %v59_v47  ;;  %v1087_v14 = vld [vmem:[%s1638_s0 + $0x68] sm:$0xff]  ;;  %v1076_v15 = vld [vmem:[%s1638_s0 + $0x50] sm:$0xff]  ;;  %v263_v17 = vld [vmem:[%s1640_s2 + $0x18] sm:$0xff] }
  0x3d   :  { %1215 = vmatprep.mubr.msk.f32.mxu1 %vm65_vm0, %v1064_v49  ;;  %1311 = vmatprep.subr.bf16.mxu0 %v1310_v48  ;;  %v1088_v16 = vld [vmem:[%s1638_s0 + $0x70] sm:$0xff]  ;;  %v1077_v18 = vld [vmem:[%s1638_s0 + $0x58] sm:$0xff]  ;;  %v261_v19 = vld [vmem:[%s1640_s2 + $0x8] sm:$0xff] }
  0x3e   :  { %1188 = vmatmul.mubr.msk.f32.gmra.mrb[2].mxu0 %vm65_vm0, %v60_v53  ;;  %1327 = vmatprep.subr.bf16.mxu1 %v1326_v50  ;;  %v1089_v20 = vld [vmem:[%s1638_s0 + $0x78] sm:$0xff]  ;;  %v509_v21 = vld [vmem:[%s1640_s2 + $0x28] sm:$0xff]  ;;  %v508_v22 = vld [vmem:[%s1640_s2 + $0x20] sm:$0xff] }
  0x3f   :  { %1216 = vmatmul.mubr.msk.f32.gmra.mrb[2].mxu1 %vm65_vm0, %v1065_v56  ;;  %1313 = vmatpush3.bf16.msra.mxu0 %v1310_v48  ;;  %v511_v23 = vld [vmem:[%s1640_s2 + $0x38] sm:$0xff]  ;;  %v510_v24 = vld [vmem:[%s1640_s2 + $0x30] sm:$0xff]  ;;  %v757_v25 = vld [vmem:[%s1640_s2 + $0x48] sm:$0xff] }
  0x40   :  { %1329 = vmatpush3.bf16.msra.mxu1 %v1326_v50  ;;  %1226 = vmatprep.mubr.msk.f32.mxu0 %vm65_vm0, %v558_v57  ;;  %v756_v26 = vld [vmem:[%s1640_s2 + $0x40] sm:$0xff]  ;;  %v759_v27 = vld [vmem:[%s1640_s2 + $0x58] sm:$0xff]  ;;  %v758_v28 = vld [vmem:[%s1640_s2 + $0x50] sm:$0xff] }
  0x41   :  { %1254 = vmatprep.mubr.msk.f32.mxu1 %vm65_vm0, %v806_v59  ;;  %1315 = vmatprep.subr.bf16.mxu0 %v1314_v58  ;;  %v1005_v29 = vld [vmem:[%s1640_s2 + $0x68] sm:$0xff]  ;;  %v1004_v30 = vld [vmem:[%s1640_s2 + $0x60] sm:$0xff]  ;;  %v1007_v31 = vld [vmem:[%s1640_s2 + $0x78] sm:$0xff] }
  0x42   :  { %1227 = vmatmul.mubr.msk.f32.vlgmr.msra.gmra.mrb[4].mxu0 %vm65_vm0, %v559_v63  ;;  %1331 = vmatprep.subr.bf16.mxu1 %v1330_v60  ;;  %v1006_v32 = vld [vmem:[%s1640_s2 + $0x70] sm:$0xff]  ;;  %s1439_s2 = smov [#allocation7]  }
  0x43   :  { %1255 = vmatmul.mubr.msk.f32.vlgmr.msra.gmra.mrb[4].mxu1 %vm65_vm0, %v807_v2  ;;  %1317 = vmatpush3.bf16.msra.mxu0 %v1314_v58  ;;  %s1041_s24 = sshll.u32 %s1439_s2, 4  ;;  %s1042_s24 = int_to_ptr.vmem [resolvable:$true] %s1041_s24 }
  0x44   :  { %1333 = vmatpush3.bf16.msra.mxu1 %v1330_v60  ;;  %1229 = vmatprep.mubr.msk.f32.mxu0 %vm65_vm0, %v560_v3  ;;  %s1406_s27 = scalar_lea.vmem %s1042_s24, 2048  ;;  %p1411_p3 = scmp.lt.s32.totalorder %s1042_s24, %s1042_s24 }
  0x45   :  { %1257 = vmatprep.mubr.msk.f32.mxu1 %vm65_vm0, %v808_v5  ;;  %1319 = vmatprep.subr.bf16.mxu0 %v1318_v4  ;;  %p1407_p2 = scmp.ne.s32.totalorder %s1042_s24, %s1406_s27  ;;  %p1412_p4 = scmp.lt.s32.totalorder %s1406_s27, %s1406_s27 }
  0x46   :  { %1230 = vmatmul.mubr.msk.f32.gmra.mrb[6].mxu0 %vm65_vm0, %v561_v7  ;;  %1335 = vmatprep.subr.bf16.mxu1 %v1334_v6 }
  0x47   :  { %1258 = vmatmul.mubr.msk.f32.gmra.mrb[6].mxu1 %vm65_vm0, %v809_v8  ;;  %1321 = vmatpush3.bf16.msra.mxu0 %v1318_v4  ;;  %p1413_p5 = por %p1412_p4, %p1411_p3 }
  0x48   :  { %1337 = vmatpush3.bf16.msra.mxu1 %v1334_v6  ;;  %1240 = vmatprep.mubr.msk.f32.mxu0 %vm65_vm0, %v1074_v9 }
  0x49   :  { %1268 = vmatprep.mubr.msk.f32.mxu1 %vm65_vm0, %v1086_v10  ;;  %276 = vperm.xlu1 %1361, %v262_v11   ;;  %p1414_p6 = pnand %p1413_p5, %p1407_p2 }
  0x4a   :  { %1241 = vmatmul.mubr.msk.f32.vlgmr.msra.gmra.mrb[4].mxu0 %vm65_vm0, %v1075_v12  ;;  %266 = vperm.xlu0 %1360, %v260_v13  }
  0x4b   :  { %1269 = vmatmul.mubr.msk.f32.vlgmr.msra.gmra.mrb[4].mxu1 %vm65_vm0, %v1087_v14  ;;  %1243 = vmatprep.mubr.msk.f32.mxu0 %vm65_vm0, %v1076_v15 }
  0x4c   :  { %1271 = vmatprep.mubr.msk.f32.mxu1 %vm65_vm0, %v1088_v16 }
  0x4d   :  { %281 = vperm.xlu1 %1361, %v263_v17  }
  0x4e   :  { %1244 = vmatmul.mubr.msk.f32.gmra.mrb[6].mxu0 %vm65_vm0, %v1077_v18  ;;  %271 = vperm.xlu0 %1360, %v261_v19  }
  0x4f   :  { %1272 = vmatmul.mubr.msk.f32.gmra.mrb[6].mxu1 %vm65_vm0, %v1089_v20 }
  0x51   :  { %519 = vperm.xlu1 %1361, %v509_v21  }
  0x52   :  { %514 = vperm.xlu0 %1360, %v508_v22  }
  0x55   :  { %529 = vperm.xlu1 %1361, %v511_v23  }
  0x56   :  { %524 = vperm.xlu0 %1360, %v510_v24  }
  0x59   :  { %767 = vperm.xlu1 %1361, %v757_v25  }
  0x5a   :  { %762 = vperm.xlu0 %1360, %v756_v26  }
  0x5d   :  { %777 = vperm.xlu1 %1361, %v759_v27  }
  0x5e   :  { %772 = vperm.xlu0 %1360, %v758_v28  }
  0x61   :  { %1015 = vperm.xlu1 %1361, %v1005_v29  }
  0x62   :  { %1010 = vperm.xlu0 %1360, %v1004_v30  }
  0x65   :  { %1025 = vperm.xlu1 %1361, %v1007_v31  }
  0x66   :  { %1020 = vperm.xlu0 %1360, %v1006_v32  }
  0xc8   :  { %v277_v33 = vpop.permute.xlu1 %276 }
  0xc9   :  { %v267_v34 = vpop.permute.xlu0 %266 }
  0xcc   :  { %v282_v35 = vpop.permute.xlu1 %281 }
  0xcd   :  { %v272_v36 = vpop.permute.xlu0 %271 }
  0xd0   :  { %v520_v37 = vpop.permute.xlu1 %519 }
  0xd1   :  { %v515_v38 = vpop.permute.xlu0 %514 }
  0xd4   :  { %v530_v39 = vpop.permute.xlu1 %529 }
  0xd5   :  { %v525_v40 = vpop.permute.xlu0 %524 }
  0xd8   :  { %v768_v45 = vpop.permute.xlu1 %767 }
  0xd9   :  { %v763_v50 = vpop.permute.xlu0 %762 }
  0xdc   :  { %v778_v59 = vpop.permute.xlu1 %777 }
  0xdd   :  { %v773_v60 = vpop.permute.xlu0 %772 }
  0xe0   :  { %v1016_v61 = vpop.permute.xlu1 %1015 }
  0xe1   :  { %v1011_v62 = vpop.permute.xlu0 %1010 }
  0xe4   :  { %v1026_v7 = vpop.permute.xlu1 %1025 }
  0xe5   :  { %v1021_v12 = vpop.permute.xlu0 %1020 }
 0x10d   :  { %v1186_v41 = vpop.f32.mrb[0].mxu0 }
 0x10e   :  { %v285_v42 = vadd.f32 %v1186_v41, %v272_v36  ;;  %v1214_v43 = vpop.f32.mrb[0].mxu1  ;;  %v241_v44 = vpop.f32.mrb[1].mxu0 }
 0x10f   :  { %v533_v46 = vadd.f32 %v1214_v43, %v520_v37  ;;  %v284_v47 = vadd.f32 %v267_v34, %v241_v44  ;;  %v489_v48 = vpop.f32.mrb[1].mxu1 }
 0x110   :  { %289 = vst [vmem:[#allocation7 + $0x8] sm:$0xff] %v285_v42  ;;  %v532_v49 = vadd.f32 %v515_v38, %v489_v48 }
 0x111   :  { %537 = vst [vmem:[#allocation7 + $0x28] sm:$0xff] %v533_v46  ;;  %288 = vst [vmem:[#allocation7] sm:$0xff] %v284_v47  ;;  %v1189_v51 = vpop.f32.mrb[2].mxu0 }
 0x112   :  { %536 = vst [vmem:[#allocation7 + $0x20] sm:$0xff] %v532_v49  ;;  %v287_v52 = vadd.f32 %v1189_v51, %v282_v35  ;;  %v1217_v53 = vpop.f32.mrb[2].mxu1  ;;  %v251_v54 = vpop.f32.mrb[3].mxu0 }
 0x113   :  { %v535_v55 = vadd.f32 %v1217_v53, %v530_v39  ;;  %v286_v56 = vadd.f32 %v277_v33, %v251_v54  ;;  %v499_v57 = vpop.f32.mrb[3].mxu1 }
 0x114   :  { %291 = vst [vmem:[#allocation7 + $0x18] sm:$0xff] %v287_v52  ;;  %v534_v58 = vadd.f32 %v525_v40, %v499_v57 }
 0x115   :  { %539 = vst [vmem:[#allocation7 + $0x38] sm:$0xff] %v535_v55  ;;  %290 = vst [vmem:[#allocation7 + $0x10] sm:$0xff] %v286_v56 }
 0x116   :  { %538 = vst [vmem:[#allocation7 + $0x30] sm:$0xff] %v534_v58 }
 0x11d   :  { %v1242_v63 = vpop.f32.mrb[4].mxu0 }
 0x11e   :  { %v781_v0 = vadd.f32 %v1242_v63, %v768_v45  ;;  %v1270_v1 = vpop.f32.mrb[4].mxu1  ;;  %v737_v2 = vpop.f32.mrb[5].mxu0 }
 0x11f   :  { %v1029_v3 = vadd.f32 %v1270_v1, %v1016_v61  ;;  %v780_v4 = vadd.f32 %v763_v50, %v737_v2  ;;  %v985_v5 = vpop.f32.mrb[5].mxu1 }
 0x120   :  { %785 = vst [vmem:[#allocation7 + $0x48] sm:$0xff] %v781_v0  ;;  %v1028_v6 = vadd.f32 %v1011_v62, %v985_v5 }
 0x121   :  { %1033 = vst [vmem:[#allocation7 + $0x68] sm:$0xff] %v1029_v3  ;;  %784 = vst [vmem:[#allocation7 + $0x40] sm:$0xff] %v780_v4  ;;  %v1245_v8 = vpop.f32.mrb[6].mxu0 }
 0x122   :  { %1032 = vst [vmem:[#allocation7 + $0x60] sm:$0xff] %v1028_v6  ;;  %v783_v9 = vadd.f32 %v1245_v8, %v778_v59  ;;  %v1273_v10 = vpop.f32.mrb[6].mxu1  ;;  %v747_v11 = vpop.f32.mrb[7].mxu0 }
 0x123   :  { %v1031_v13 = vadd.f32 %v1273_v10, %v1026_v7  ;;  %v782_v14 = vadd.f32 %v773_v60, %v747_v11  ;;  %v995_v15 = vpop.f32.mrb[7].mxu1 }
 0x124   :  { %787 = vst [vmem:[#allocation7 + $0x58] sm:$0xff] %v783_v9  ;;  %v1030_v16 = vadd.f32 %v1021_v12, %v995_v15 }
 0x125   :  { %1035 = vst [vmem:[#allocation7 + $0x78] sm:$0xff] %v1031_v13  ;;  %786 = vst [vmem:[#allocation7 + $0x50] sm:$0xff] %v782_v14 }
 0x126   :  { %1034 = vst [vmem:[#allocation7 + $0x70] sm:$0xff] %v1030_v16 }
 0x127   :  { %1417 = shalt.err (!%p1414_p6)
}
 0x128   :  { %s1418_s30 = scalar_lea.hbm %s1642_s4, 2048 }
 0x129   :  { %p1419_p7 = scmp.ne.s32.totalorder %s1642_s4, %s1418_s30  ;;  %p1422_p8 = scmp.lt.u32.totalorder %s1418_s30, %s1642_s4 }
 0x12b   :  { %p1424_p9 = pnand %p1422_p8, %p1419_p7 }
 0x12d   :  { %1427 = shalt.err (!%p1424_p9)
}
 0x12e   :  { %1047 = dma.vmem_to_hbm [thread:$0]  %s1042_s24, 2048, %s1642_s4, [#allocation4], %s1435_s25, %s1435_s25, %s1436_s26  }
 0x12f   :  { %1432 = dma.done.wait [#allocation4], 2048  }
 0x130   :  { %1433 = vsyncadd [#allocation4], 4294965248 }
 0x131   :  { %1051 = vsyncpa [#allocation3], 1 }
 0x132   :  { %1052 = vsyncpa [#allocation6], 1 }
 0x133   :  { %1053 = vsyncpa [#allocation4], 1 }

</bundles_post_ra>
